<compile_context>
chip_gen: v5e
topology: v5e:2x2
jax: 0.10.0
libtpu: 0.0.40
codegen_flags: <defaults>
</compile_context>

<pallas_src>
import functools

import jax
import jax.numpy as jnp
from jax.experimental import pallas as pl
from jax.experimental.pallas import tpu as pltpu

IGNORE_INDEX = -1     # nn.CrossEntropyLoss(ignore_index=-1)
SEG_LOSS_W = 1.0      # configer.get('network','loss_weights')['seg_loss']
AUX_LOSS_W = 0.4      # configer.get('network','loss_weights')['aux_loss']


def _vmem_plan():
    """Return (logits-block byte budget, vmem_limit_bytes) for this chip generation."""
    vmem_cap = 64 << 20                      # conservative default (v7x per-TC VMEM)
    try:
        info = pltpu.get_tpu_info()
        vmem_cap = int(getattr(info, "vmem_capacity_bytes", vmem_cap)) or vmem_cap
    except Exception:
        pass
    if vmem_cap >= (100 << 20):              # v5e / v6e: 128 MiB physical VMEM
        return 14 << 20, 80 << 20
    return 10 << 20, 48 << 20                # v7x: 64 MiB per TensorCore


def _ce_kernel(logits_ref, tgt_ref, sum_ref, cnt_ref, *,
               hw, pix_per_block, need_tail_mask):
    """Partial CE over one (C, S, L) logits block; classes live on the leading axis."""
    logits = logits_ref[...].astype(jnp.float32)          # (C, S, L) upcast in vregs
    tgt = tgt_ref[...]                                     # (S, L) int32
    s, l = tgt.shape

    # log-sum-exp over classes: elementwise max/add across C dense (S, L) slabs
    m = jnp.max(logits, axis=0)                                            # (S, L)
    lse = m + jnp.log(jnp.sum(jnp.exp(logits - m[None]), axis=0))          # (S, L)

    # logit at the target class via one-hot select (no dynamic gather on TPU)
    class_ids = jax.lax.broadcasted_iota(jnp.int32, logits.shape, 0)       # (C, S, L)
    picked = jnp.sum(jnp.where(class_ids == tgt[None], logits, 0.0), axis=0)

    # Only ignore_index == -1 is ignored (255-style ignore labels are NOT handled).
    valid = tgt != IGNORE_INDEX
    if need_tail_mask:
        # mask pixels of the ragged tail block (DMA past H*W reads garbage)
        t = pl.program_id(1)
        local = (jax.lax.broadcasted_iota(jnp.int32, (s, l), 0) * l
                 + jax.lax.broadcasted_iota(jnp.int32, (s, l), 1))
        valid = valid & ((t * pix_per_block + local) < hw)

    per_pixel = jnp.where(valid, lse - picked, 0.0)
    sum_ref[...] = jnp.sum(per_pixel, keepdims=True)                       # (1, 1)
    cnt_ref[...] = jnp.sum(valid.astype(jnp.float32), keepdims=True)       # (1, 1)


def _ce_mean(logits_nchw, tgt_nhw):
    """Mean cross-entropy (ignore_index=-1) over NCHW logits and (N,H,W) int targets."""
    n, c, h, w = logits_nchw.shape
    hw = h * w
    itemsize = jnp.dtype(logits_nchw.dtype).itemsize
    budget, vmem_limit = _vmem_plan()

    if hw % 128 == 0:
        # (sublane, lane) pixel layout -- free contiguous reshape, dense per-pixel slabs
        rows, lanes = hw // 128, 128
        row_budget = budget // max(1, c * lanes * itemsize)
        if row_budget >= rows:
            tile_rows = rows
        else:
            tile_rows = min(rows, max(8, (row_budget // 8) * 8))
        tile_lanes = lanes
        num_tiles = pl.cdiv(rows, tile_rows)
        lg_index = lambda b, t: (b, 0, t, 0)
        tg_index = lambda b, t: (b, t, 0)
    else:
        # rare fallback: single sublane row, pixels on lanes, ragged tail block (no pad)
        rows, lanes = 1, hw
        lane_budget = budget // max(1, c * itemsize)
        tile_rows = 1
        tile_lanes = hw if lane_budget >= hw else max(128, (lane_budget // 128) * 128)
        num_tiles = pl.cdiv(hw, tile_lanes)
        lg_index = lambda b, t: (b, 0, 0, t)
        tg_index = lambda b, t: (b, 0, t)

    pix_per_block = tile_rows * tile_lanes
    need_tail_mask = (num_tiles * pix_per_block) != hw

    logits = logits_nchw.reshape(n, c, rows, lanes)          # free reshape, native dtype
    tgt = tgt_nhw.astype(jnp.int32).reshape(n, rows, lanes)  # lane-dense target stream

    # keep the scoped limit above the double-buffered working set (pathological C guard)
    needed = 2 * pix_per_block * (c * itemsize + 4) + (2 << 20)
    vmem_limit = int(max(vmem_limit, needed))

    kernel = functools.partial(_ce_kernel, hw=hw, pix_per_block=pix_per_block,
                               need_tail_mask=need_tail_mask)
    sums, cnts = pl.pallas_call(
        kernel,
        out_shape=(jax.ShapeDtypeStruct((n, num_tiles, 1, 1), jnp.float32),
                   jax.ShapeDtypeStruct((n, num_tiles, 1, 1), jnp.float32)),
        grid_spec=pltpu.PrefetchScalarGridSpec(
            num_scalar_prefetch=0,
            grid=(n, num_tiles),
            in_specs=[pl.BlockSpec((None, c, tile_rows, tile_lanes), lg_index),
                      pl.BlockSpec((None, tile_rows, tile_lanes), tg_index)],
            # per-(batch, tile) partials: every grid point owns its own output block, so
            # both grid axes can be "parallel" (v7x megacore); reduced in JAX below.
            out_specs=(pl.BlockSpec((None, None, 1, 1), lambda b, t: (b, t, 0, 0)),
                       pl.BlockSpec((None, None, 1, 1), lambda b, t: (b, t, 0, 0)))),
        compiler_params=pltpu.CompilerParams(
            dimension_semantics=("parallel", "parallel"),
            vmem_limit_bytes=vmem_limit),
    )(logits, tgt)
    # NaN if every pixel is ignore_index -- matches PyTorch mean-reduction CE.
    return jnp.sum(sums) / jnp.sum(cnts)


def _scale_target_nearest(targets_nhw, out_h, out_w):
    """F.interpolate(mode='nearest') on integer targets: src = floor(dst * in/out)."""
    _, in_h, in_w = targets_nhw.shape
    if (in_h, in_w) == (out_h, out_w):
        return targets_nhw                                   # identity resize: skip copy
    ridx = jnp.floor(jnp.arange(out_h) * (in_h / out_h)).astype(jnp.int32)
    cidx = jnp.floor(jnp.arange(out_w) * (in_w / out_w)).astype(jnp.int32)
    return targets_nhw[:, ridx][:, :, cidx]


def fs_ce_loss(logits_nchw, targets_nhw):
    """FSCELoss.forward for a single tensor input (weight=None, mean reduction)."""
    _, _, h, w = logits_nchw.shape
    tgt = _scale_target_nearest(targets_nhw, h, w)
    return _ce_mean(logits_nchw, tgt)


def fs_aux_ce_loss(aux_out, seg_out, targets):
    """FSAuxCELoss.forward((aux_out, seg_out), targets)."""
    # Two pallas_calls under one jit: seg/aux have different spatial sizes, and
    # concatenating their pixel streams would cost an extra HBM copy of the logits.
    seg_loss = fs_ce_loss(seg_out, targets)
    aux_loss = fs_ce_loss(aux_out, targets)
    return SEG_LOSS_W * seg_loss + AUX_LOSS_W * aux_loss


def _ref_ce(logits_nchw, targets_nhw):
    """Pure-JAX reference for correctness checking."""
    n, c, h, w = logits_nchw.shape
    tgt = _scale_target_nearest(targets_nhw, h, w).reshape(-1)
    lp = jnp.transpose(logits_nchw, (0, 2, 3, 1)).reshape(-1, c).astype(jnp.float32)
    lse = jax.nn.logsumexp(lp, axis=-1)
    picked = jnp.take_along_axis(lp, jnp.clip(tgt, 0, c - 1)[:, None], axis=-1)[:, 0]
    valid = tgt != IGNORE_INDEX
    return jnp.sum(jnp.where(valid, lse - picked, 0.0)) / jnp.sum(valid)


if __name__ == "__main__":
    key = jax.random.PRNGKey(0)
    k1, k2, k3 = jax.random.split(key, 3)

    N, C, H, W = 2, 4, 16, 16
    seg_out = jax.random.normal(k1, (N, C, H, W), dtype=jnp.float32)
    aux_out = jax.random.normal(k2, (N, C, H // 2, W // 2), dtype=jnp.float32)
    # targets in [-1, C): -1 pixels are ignored by the CE loss
    targets = jax.random.randint(k3, (N, H, W), -1, C, dtype=jnp.int32)

    loss = jax.jit(fs_aux_ce_loss)(aux_out, seg_out, targets)
    jax.block_until_ready(loss)

    ref = SEG_LOSS_W * _ref_ce(seg_out, targets) + AUX_LOSS_W * _ref_ce(aux_out, targets)
    assert jnp.allclose(loss, ref, rtol=1e-4, atol=1e-4), (loss, ref)

    print("KERNEL_OK")
</pallas_src>

<mosaic_0001>
module attributes {stable_mosaic.version = 11 : i64} {
  func.func @_ce_kernel(%arg0: i32, %arg1: i32, %arg2: memref<1x4x1x64xf32, #tpu.memory_space<vmem>>, %arg3: memref<1x1x64xi32, #tpu.memory_space<vmem>>, %arg4: memref<1x1x1x1xf32, #tpu.memory_space<vmem>>, %arg5: memref<1x1x1x1xf32, #tpu.memory_space<vmem>>) attributes {dimension_semantics = [#tpu.dimension_semantics<parallel>, #tpu.dimension_semantics<parallel>], iteration_bounds = array<i64: 2, 1>, scalar_prefetch = 0 : i64, scratch_operands = 0 : i64, tpu.core_type = #tpu.core_type<tc>, window_params = [{transform_indices = @transform_0, window_bounds = array<i64: 1, 4, 1, 64>}, {transform_indices = @transform_1, window_bounds = array<i64: 1, 1, 64>}, {transform_indices = @transform_2, window_bounds = array<i64: 1, 1, 1, 1>}, {transform_indices = @transform_3, window_bounds = array<i64: 1, 1, 1, 1>}]} {
    %c0 = arith.constant 0 : index
    %c0_0 = arith.constant 0 : index
    %c0_1 = arith.constant 0 : index
    %c0_2 = arith.constant 0 : index
    %0 = vector.load %arg2[%c0, %c0_0, %c0_1, %c0_2] : memref<1x4x1x64xf32, #tpu.memory_space<vmem>>, vector<1x4x1x64xf32>
    %1 = vector.shape_cast %0 : vector<1x4x1x64xf32> to vector<4x1x64xf32>
    %c0_3 = arith.constant 0 : index
    %c0_4 = arith.constant 0 : index
    %c0_5 = arith.constant 0 : index
    %2 = vector.load %arg3[%c0_3, %c0_4, %c0_5] : memref<1x1x64xi32, #tpu.memory_space<vmem>>, vector<1x1x64xi32>
    %3 = vector.shape_cast %2 : vector<1x1x64xi32> to vector<1x64xi32>
    %cst = arith.constant dense<0xFF800000> : vector<1x64xf32>
    %4 = vector.multi_reduction <maximumf>, %1, %cst [0] : vector<4x1x64xf32> to vector<1x64xf32>
    %5 = vector.shape_cast %4 : vector<1x64xf32> to vector<1x1x64xf32>
    %6 = vector.broadcast %5 : vector<1x1x64xf32> to vector<4x1x64xf32>
    %7 = arith.subf %1, %6 : vector<4x1x64xf32>
    %8 = math.exp %7 : vector<4x1x64xf32>
    %cst_6 = arith.constant dense<0.000000e+00> : vector<1x64xf32>
    %9 = vector.multi_reduction <add>, %8, %cst_6 [0] : vector<4x1x64xf32> to vector<1x64xf32>
    %10 = math.log %9 : vector<1x64xf32>
    %11 = arith.addf %4, %10 : vector<1x64xf32>
    %12 = tpu.iota {dimensions = array<i32: 0>} : vector<4x1x64xi32>
    %13 = vector.shape_cast %3 : vector<1x64xi32> to vector<1x1x64xi32>
    %14 = vector.broadcast %13 : vector<1x1x64xi32> to vector<4x1x64xi32>
    %15 = arith.cmpi eq, %12, %14 : vector<4x1x64xi32>
    %cst_7 = arith.constant 0.000000e+00 : f32
    %16 = vector.broadcast %cst_7 : f32 to vector<4x1x64xf32>
    %17 = arith.select %15, %1, %16 : vector<4x1x64xi1>, vector<4x1x64xf32>
    %cst_8 = arith.constant dense<0.000000e+00> : vector<1x64xf32>
    %18 = vector.multi_reduction <add>, %17, %cst_8 [0] : vector<4x1x64xf32> to vector<1x64xf32>
    %c-1_i32 = arith.constant -1 : i32
    %19 = vector.broadcast %c-1_i32 : i32 to vector<1x64xi32>
    %20 = arith.cmpi ne, %3, %19 : vector<1x64xi32>
    %21 = arith.subf %11, %18 : vector<1x64xf32>
    %cst_9 = arith.constant 0.000000e+00 : f32
    %22 = vector.broadcast %cst_9 : f32 to vector<1x64xf32>
    %23 = arith.select %20, %21, %22 : vector<1x64xi1>, vector<1x64xf32>
    %24 = vector.shape_cast %23 : vector<1x64xf32> to vector<1x1x64xf32>
    %cst_10 = arith.constant dense<0.000000e+00> : vector<1xf32>
    %25 = vector.multi_reduction <add>, %24, %cst_10 [1, 2] : vector<1x1x64xf32> to vector<1xf32>
    %26 = vector.shape_cast %25 : vector<1xf32> to vector<1x1x1xf32>
    %27 = vector.extract %26[0, 0, 0] : f32 from vector<1x1x1xf32>
    %28 = vector.broadcast %27 : f32 to vector<1x1xf32>
    %c0_11 = arith.constant 0 : index
    %c0_12 = arith.constant 0 : index
    %c0_13 = arith.constant 0 : index
    %c0_14 = arith.constant 0 : index
    %29 = vector.load %arg4[%c0_11, %c0_12, %c0_13, %c0_14] : memref<1x1x1x1xf32, #tpu.memory_space<vmem>>, vector<1x1x1x1xf32>
    %30 = vector.shape_cast %29 : vector<1x1x1x1xf32> to vector<1x1xf32>
    %31 = vector.shape_cast %28 : vector<1x1xf32> to vector<1x1x1x1xf32>
    tpu.vector_store %arg4[%c0_11, %c0_12, %c0_13, %c0_14], %31 {strides = array<i32>} : memref<1x1x1x1xf32, #tpu.memory_space<vmem>>, vector<1x1x1x1xf32>,
    %32 = arith.extui %20 : vector<1x64xi1> to vector<1x64xi32>
    %33 = arith.sitofp %32 : vector<1x64xi32> to vector<1x64xf32>
    %34 = vector.shape_cast %33 : vector<1x64xf32> to vector<1x1x64xf32>
    %cst_15 = arith.constant dense<0.000000e+00> : vector<1xf32>
    %35 = vector.multi_reduction <add>, %34, %cst_15 [1, 2] : vector<1x1x64xf32> to vector<1xf32>
    %36 = vector.shape_cast %35 : vector<1xf32> to vector<1x1x1xf32>
    %37 = vector.extract %36[0, 0, 0] : f32 from vector<1x1x1xf32>
    %38 = vector.broadcast %37 : f32 to vector<1x1xf32>
    %c0_16 = arith.constant 0 : index
    %c0_17 = arith.constant 0 : index
    %c0_18 = arith.constant 0 : index
    %c0_19 = arith.constant 0 : index
    %39 = vector.load %arg5[%c0_16, %c0_17, %c0_18, %c0_19] : memref<1x1x1x1xf32, #tpu.memory_space<vmem>>, vector<1x1x1x1xf32>
    %40 = vector.shape_cast %39 : vector<1x1x1x1xf32> to vector<1x1xf32>
    %41 = vector.shape_cast %38 : vector<1x1xf32> to vector<1x1x1x1xf32>
    tpu.vector_store %arg5[%c0_16, %c0_17, %c0_18, %c0_19], %41 {strides = array<i32>} : memref<1x1x1x1xf32, #tpu.memory_space<vmem>>, vector<1x1x1x1xf32>,
    return
  }
  func.func @transform_0(%arg0: i32, %arg1: i32) -> (i32, i32, i32, i32) {
    %c0_i32 = arith.constant 0 : i32
    %c0_i32_0 = arith.constant 0 : i32
    %c0_i32_1 = arith.constant 0 : i32
    return %arg0, %c0_i32, %c0_i32_0, %arg1 : i32, i32, i32, i32
  }
  func.func @transform_1(%arg0: i32, %arg1: i32) -> (i32, i32, i32) {
    %c0_i32 = arith.constant 0 : i32
    %c0_i32_0 = arith.constant 0 : i32
    return %arg0, %c0_i32, %arg1 : i32, i32, i32
  }
  func.func @transform_2(%arg0: i32, %arg1: i32) -> (i32, i32, i32, i32) {
    %c0_i32 = arith.constant 0 : i32
    %c0_i32_0 = arith.constant 0 : i32
    %c0_i32_1 = arith.constant 0 : i32
    return %arg0, %arg1, %c0_i32, %c0_i32_0 : i32, i32, i32, i32
  }
  func.func @transform_3(%arg0: i32, %arg1: i32) -> (i32, i32, i32, i32) {
    %c0_i32 = arith.constant 0 : i32
    %c0_i32_0 = arith.constant 0 : i32
    %c0_i32_1 = arith.constant 0 : i32
    return %arg0, %arg1, %c0_i32, %c0_i32_0 : i32, i32, i32, i32
  }
}

module attributes {stable_mosaic.version = 11 : i64} {
  func.func @_ce_kernel(%arg0: i32, %arg1: i32, %arg2: memref<1x4x2x128xf32, #tpu.memory_space<vmem>>, %arg3: memref<1x2x128xi32, #tpu.memory_space<vmem>>, %arg4: memref<1x1x1x1xf32, #tpu.memory_space<vmem>>, %arg5: memref<1x1x1x1xf32, #tpu.memory_space<vmem>>) attributes {dimension_semantics = [#tpu.dimension_semantics<parallel>, #tpu.dimension_semantics<parallel>], iteration_bounds = array<i64: 2, 1>, scalar_prefetch = 0 : i64, scratch_operands = 0 : i64, tpu.core_type = #tpu.core_type<tc>, window_params = [{transform_indices = @transform_0, window_bounds = array<i64: 1, 4, 2, 128>}, {transform_indices = @transform_1, window_bounds = array<i64: 1, 2, 128>}, {transform_indices = @transform_2, window_bounds = array<i64: 1, 1, 1, 1>}, {transform_indices = @transform_3, window_bounds = array<i64: 1, 1, 1, 1>}]} {
    %c0 = arith.constant 0 : index
    %c0_0 = arith.constant 0 : index
    %c0_1 = arith.constant 0 : index
    %c0_2 = arith.constant 0 : index
    %0 = vector.load %arg2[%c0, %c0_0, %c0_1, %c0_2] : memref<1x4x2x128xf32, #tpu.memory_space<vmem>>, vector<1x4x2x128xf32>
    %1 = vector.shape_cast %0 : vector<1x4x2x128xf32> to vector<4x2x128xf32>
    %c0_3 = arith.constant 0 : index
    %c0_4 = arith.constant 0 : index
    %c0_5 = arith.constant 0 : index
    %2 = vector.load %arg3[%c0_3, %c0_4, %c0_5] : memref<1x2x128xi32, #tpu.memory_space<vmem>>, vector<1x2x128xi32>
    %3 = vector.shape_cast %2 : vector<1x2x128xi32> to vector<2x128xi32>
    %cst = arith.constant dense<0xFF800000> : vector<2x128xf32>
    %4 = vector.multi_reduction <maximumf>, %1, %cst [0] : vector<4x2x128xf32> to vector<2x128xf32>
    %5 = vector.shape_cast %4 : vector<2x128xf32> to vector<1x2x128xf32>
    %6 = vector.broadcast %5 : vector<1x2x128xf32> to vector<4x2x128xf32>
    %7 = arith.subf %1, %6 : vector<4x2x128xf32>
    %8 = math.exp %7 : vector<4x2x128xf32>
    %cst_6 = arith.constant dense<0.000000e+00> : vector<2x128xf32>
    %9 = vector.multi_reduction <add>, %8, %cst_6 [0] : vector<4x2x128xf32> to vector<2x128xf32>
    %10 = math.log %9 : vector<2x128xf32>
    %11 = arith.addf %4, %10 : vector<2x128xf32>
    %12 = tpu.iota {dimensions = array<i32: 0>} : vector<4x2x128xi32>
    %13 = vector.shape_cast %3 : vector<2x128xi32> to vector<1x2x128xi32>
    %14 = vector.broadcast %13 : vector<1x2x128xi32> to vector<4x2x128xi32>
    %15 = arith.cmpi eq, %12, %14 : vector<4x2x128xi32>
    %cst_7 = arith.constant 0.000000e+00 : f32
    %16 = vector.broadcast %cst_7 : f32 to vector<4x2x128xf32>
    %17 = arith.select %15, %1, %16 : vector<4x2x128xi1>, vector<4x2x128xf32>
    %cst_8 = arith.constant dense<0.000000e+00> : vector<2x128xf32>
    %18 = vector.multi_reduction <add>, %17, %cst_8 [0] : vector<4x2x128xf32> to vector<2x128xf32>
    %c-1_i32 = arith.constant -1 : i32
    %19 = vector.broadcast %c-1_i32 : i32 to vector<2x128xi32>
    %20 = arith.cmpi ne, %3, %19 : vector<2x128xi32>
    %21 = arith.subf %11, %18 : vector<2x128xf32>
    %cst_9 = arith.constant 0.000000e+00 : f32
    %22 = vector.broadcast %cst_9 : f32 to vector<2x128xf32>
    %23 = arith.select %20, %21, %22 : vector<2x128xi1>, vector<2x128xf32>
    %24 = vector.shape_cast %23 : vector<2x128xf32> to vector<1x2x128xf32>
    %cst_10 = arith.constant dense<0.000000e+00> : vector<1xf32>
    %25 = vector.multi_reduction <add>, %24, %cst_10 [1, 2] : vector<1x2x128xf32> to vector<1xf32>
    %26 = vector.shape_cast %25 : vector<1xf32> to vector<1x1x1xf32>
    %27 = vector.extract %26[0, 0, 0] : f32 from vector<1x1x1xf32>
    %28 = vector.broadcast %27 : f32 to vector<1x1xf32>
    %c0_11 = arith.constant 0 : index
    %c0_12 = arith.constant 0 : index
    %c0_13 = arith.constant 0 : index
    %c0_14 = arith.constant 0 : index
    %29 = vector.load %arg4[%c0_11, %c0_12, %c0_13, %c0_14] : memref<1x1x1x1xf32, #tpu.memory_space<vmem>>, vector<1x1x1x1xf32>
    %30 = vector.shape_cast %29 : vector<1x1x1x1xf32> to vector<1x1xf32>
    %31 = vector.shape_cast %28 : vector<1x1xf32> to vector<1x1x1x1xf32>
    tpu.vector_store %arg4[%c0_11, %c0_12, %c0_13, %c0_14], %31 {strides = array<i32>} : memref<1x1x1x1xf32, #tpu.memory_space<vmem>>, vector<1x1x1x1xf32>,
    %32 = arith.extui %20 : vector<2x128xi1> to vector<2x128xi32>
    %33 = arith.sitofp %32 : vector<2x128xi32> to vector<2x128xf32>
    %34 = vector.shape_cast %33 : vector<2x128xf32> to vector<1x2x128xf32>
    %cst_15 = arith.constant dense<0.000000e+00> : vector<1xf32>
    %35 = vector.multi_reduction <add>, %34, %cst_15 [1, 2] : vector<1x2x128xf32> to vector<1xf32>
    %36 = vector.shape_cast %35 : vector<1xf32> to vector<1x1x1xf32>
    %37 = vector.extract %36[0, 0, 0] : f32 from vector<1x1x1xf32>
    %38 = vector.broadcast %37 : f32 to vector<1x1xf32>
    %c0_16 = arith.constant 0 : index
    %c0_17 = arith.constant 0 : index
    %c0_18 = arith.constant 0 : index
    %c0_19 = arith.constant 0 : index
    %39 = vector.load %arg5[%c0_16, %c0_17, %c0_18, %c0_19] : memref<1x1x1x1xf32, #tpu.memory_space<vmem>>, vector<1x1x1x1xf32>
    %40 = vector.shape_cast %39 : vector<1x1x1x1xf32> to vector<1x1xf32>
    %41 = vector.shape_cast %38 : vector<1x1xf32> to vector<1x1x1x1xf32>
    tpu.vector_store %arg5[%c0_16, %c0_17, %c0_18, %c0_19], %41 {strides = array<i32>} : memref<1x1x1x1xf32, #tpu.memory_space<vmem>>, vector<1x1x1x1xf32>,
    return
  }
  func.func @transform_0(%arg0: i32, %arg1: i32) -> (i32, i32, i32, i32) {
    %c0_i32 = arith.constant 0 : i32
    %c0_i32_0 = arith.constant 0 : i32
    %c0_i32_1 = arith.constant 0 : i32
    return %arg0, %c0_i32, %arg1, %c0_i32_0 : i32, i32, i32, i32
  }
  func.func @transform_1(%arg0: i32, %arg1: i32) -> (i32, i32, i32) {
    %c0_i32 = arith.constant 0 : i32
    %c0_i32_0 = arith.constant 0 : i32
    return %arg0, %arg1, %c0_i32 : i32, i32, i32
  }
  func.func @transform_2(%arg0: i32, %arg1: i32) -> (i32, i32, i32, i32) {
    %c0_i32 = arith.constant 0 : i32
    %c0_i32_0 = arith.constant 0 : i32
    %c0_i32_1 = arith.constant 0 : i32
    return %arg0, %arg1, %c0_i32, %c0_i32_0 : i32, i32, i32, i32
  }
  func.func @transform_3(%arg0: i32, %arg1: i32) -> (i32, i32, i32, i32) {
    %c0_i32 = arith.constant 0 : i32
    %c0_i32_0 = arith.constant 0 : i32
    %c0_i32_1 = arith.constant 0 : i32
    return %arg0, %arg1, %c0_i32, %c0_i32_0 : i32, i32, i32, i32
  }
}

</mosaic_0001>

<bundles_post_ra>
// kernel: fs_aux_ce_loss.3
= control target key start
LH: loop header
LB: loop body
LE: loop exit
PB: predicated region body
PF: predicated region fallthrough
CT: control target
= control target key end

     0   :  { %s529_s12 = smov 0   ;;  %s531_s13 = smov 0   ;;  %s584_s0 = inlined_call_operand.vmem [shape: f32[2,4,1,64], index: 0, kind: input, shape index: {}]   ;;  %s585_s1 = inlined_call_operand.vmem [shape: s32[2,1,64], index: 1, kind: input, shape index: {}]   ;;  %s586_s2 = inlined_call_operand.vmem [shape: f32[2,1,1,1], index: 2, kind: output, shape index: {0}]   ;;  %s587_s3 = inlined_call_operand.vmem [shape: f32[2,1,1,1], index: 3, kind: output, shape index: {1}]  }
   0x1   :  { %s533_s14 = smov 0  }
   0x2 LB: > { %s26_s15 = sadd.s32 1, %s502_s13  ;;  %p440_p0 = scmp.ge.s32.totalorder %s506_s14, 1  ;;  %s506_s14 = sphi %s533_s14, %s14_s14   ;;  %s502_s13 = sphi %s531_s13, %s589_s13   ;;  %s498_s12 = sphi %s529_s12, %s588_s12  }
   0x3   : > { %p28_p1 = scmp.ge.s32.totalorder %s26_s15, 2  ;;  %p173_p2 = scmp.lt.s32.totalorder %s506_s14, 3 }
   0x5   : > { %s591_s15 = smov (%p28_p1, %s26_s15), 0  ;;  %p174_p3 = pnand %p440_p0, %p173_p2 }
   0x6   : > { %p212_p4 = scmp.lt.s32.totalorder (!%p174_p3), %s498_s12, 1 }
   0x7   : > { %177 = sbr.rel (%p174_p3) target bundleno = 244 (0xf4), region = 28 }
   0xc   : > { %v242_v0 = vlaneseq  ;;  %s593_s12 = smov (!%p212_p4, %s498_s12), 1  ;;  %vm265_vm1 = vcmask 516096   ;;  %v508_v49 = vmov 0.0   ;;  %vm305_vm7 = vcmask 0  }
   0xd   : > { %s441_s16 = sshll.u32 %s593_s12, 2  ;;  %s224_s22 = scalar_lea.vmem %s585_s1, %s593_s12 }
   0xe   : > { %vm244_vm0 = vcmp.lt.s32.totalorder %v242_v0, 64  ;;  %s218_s19 = scalar_lea.vmem %s584_s0, %s441_s16  ;;  %v241_v20 = vld [vmem:[%s224_s22] sm:$0x1]  ;;  %s230_s25 = scalar_lea.vmem %s586_s2, %s593_s12 }
   0xf   : > { %v237_v1 = vld [vmem:[%s218_s19] sm:$0x1]  ;;  %v238_v2 = vld [vmem:[%s218_s19 + $0x1] sm:$0x1]  ;;  %v239_v3 = vld [vmem:[%s218_s19 + $0x2] sm:$0x1]  ;;  %s236_s29 = scalar_lea.vmem %s587_s3, %s593_s12 }
  0x10   : > { %v240_v4 = vld [vmem:[%s218_s19 + $0x3] sm:$0x1]  ;;  %v246_v5 = vsel %vm244_vm0, %v237_v1, -inf  ;;  %v247_v6 = vsel %vm244_vm0, %v238_v2, -inf  ;;  %v248_v7 = vsel %vm244_vm0, %v239_v3, -inf  ;;  %vm276_vm2 = vcmp.eq.s32.totalorder %v241_v20, 0 }
  0x11   : > { %v249_v8 = vsel %vm244_vm0, %v240_v4, -inf  ;;  %v250_v9 = vmax.f32 %v246_v5, %v247_v6  ;;  %vm277_vm3 = vcmp.eq.s32.totalorder %v241_v20, 1  ;;  %v280_v26 = vsel %vm276_vm2, %v237_v1, 0.0 }
  0x12   : > { %v251_v10 = vmax.f32 %v248_v7, %v249_v8  ;;  %v281_v27 = vsel %vm277_vm3, %v238_v2, 0.0  ;;  %vm278_vm4 = vcmp.eq.s32.totalorder %v241_v20, 2  ;;  %v284_v33 = vsel %vm265_vm1, %v280_v26, 0.0 }
  0x13   : > { %v285_v34 = vsel %vm265_vm1, %v281_v27, 0.0  ;;  %v282_v35 = vsel %vm278_vm4, %v239_v3, 0.0  ;;  %vm279_vm5 = vcmp.eq.s32.totalorder %v241_v20, 3  ;;  %vm291_vm6 = vcmp.ne.s32.totalorder %v241_v20, 4294967295 }
  0x14   : > { %v252_v11 = vmax.f32 %v250_v9, %v251_v10  ;;  %v286_v37 = vadd.f32 %v285_v34, %v284_v33  ;;  %v287_v38 = vsel %vm265_vm1, %v282_v35, 0.0  ;;  %v283_v39 = vsel %vm279_vm5, %v240_v4, 0.0 }
  0x15   : > { %v289_v41 = vsel %vm265_vm1, %v283_v39, 0.0  ;;  %v442_v50 = vsel %vm291_vm6, 1.0, %v508_v49 }
  0x16   : > { %v253_v12 = vsub.f32 %v237_v1, %v252_v11  ;;  %v254_v13 = vsub.f32 %v238_v2, %v252_v11  ;;  %v255_v14 = vsub.f32 %v239_v3, %v252_v11  ;;  %v256_v15 = vsub.f32 %v240_v4, %v252_v11 }
  0x17   : > { %v288_v40 = vadd.f32 %v287_v38, %v286_v37  ;;  %v309_v51 = vsel %vm265_vm1, %v442_v50, 0.0 }
  0x18   : > { %v257_v16 = vmul.f32 1.442695, %v253_v12  ;;  %v259_v17 = vmul.f32 1.442695, %v254_v13  ;;  %v261_v18 = vmul.f32 1.442695, %v255_v14 }
  0x19   : > { %v263_v19 = vmul.f32 1.442695, %v256_v15  ;;  %v290_v44 = vadd.f32 %v289_v41, %v288_v40 }
  0x1a   : > { %474 = vpow2.f32 %v257_v16 }
  0x1b   : > { %476 = vpow2.f32 %v259_v17 }
  0x1c   : > { %478 = vpow2.f32 %v261_v18 }
  0x1d   : > { %480 = vpow2.f32 %v263_v19 }
  0x20   : > { %v475_v21 = vpop.eup %474 }
  0x21   : > { %v477_v22 = vpop.eup %476  ;;  %v266_v23 = vsel %vm265_vm1, %v475_v21, 0.0 }
  0x22   : > { %v479_v24 = vpop.eup %478  ;;  %v267_v25 = vsel %vm265_vm1, %v477_v22, 0.0 }
  0x23   : > { %v481_v28 = vpop.eup %480  ;;  %v268_v29 = vadd.f32 %v267_v25, %v266_v23  ;;  %v269_v30 = vsel %vm265_vm1, %v479_v24, 0.0 }
  0x24   : > { %v271_v31 = vsel %vm265_vm1, %v481_v28, 0.0 }
  0x25   : > { %v270_v32 = vadd.f32 %v269_v30, %v268_v29 }
  0x27   : > { %v272_v36 = vadd.f32 %v271_v31, %v270_v32 }
  0x29   : > { %482 = vlog2.f32 %v272_v36 }
  0x2f   : > { %v483_v42 = vpop.eup %482 }
  0x30   : > { %v274_v43 = vmul.f32 0.6931472, %v483_v42 }
  0x32   : > { %v275_v45 = vadd.f32 %v274_v43, %v252_v11 }
  0x34   : > { %v292_v46 = vsub.f32 %v275_v45, %v290_v44 }
  0x36   : > { %v293_v47 = vsel %vm291_vm6, %v292_v46, 0.0 }
  0x37   : > { %v294_v48 = vsel %vm265_vm1, %v293_v47, 0.0 }
  0x38   : > { %295 = vadd.xlane.f32.xlu0 %v294_v48 }
  0x40   : > { %310 = vadd.xlane.f32.xlu0 %v309_v51 }
  0xab   : > { %v296_v52 = vpop.xlane.xlu0 %295 }
  0xac   : > { %v297_v53 = vrot.slane %v296_v52, 4 }
  0xae   : > { %v298_v54 = vadd.f32 %v297_v53, %v296_v52 }
  0xb0   : > { %v299_v55 = vrot.slane %v298_v54, 2 }
  0xb2   : > { %v300_v56 = vadd.f32 %v299_v55, %v298_v54 }
  0xb3   : > { %v311_v57 = vpop.xlane.xlu0 %310 }
  0xb4   : > { %v312_v58 = vrot.slane %v311_v57, 4  ;;  %v301_v59 = vrot.slane %v300_v56, 1 }
  0xb6   : > { %v313_v60 = vadd.f32 %v312_v58, %v311_v57  ;;  %v302_v61 = vadd.f32 %v301_v59, %v300_v56 }
  0xb8   : > { %v314_v62 = vrot.slane %v313_v60, 2  ;;  %445 = vpush %v302_v61 }
  0xba   : > { %v315_v63 = vadd.f32 %v314_v62, %v313_v60 }
  0xbc   : > { %v316_v0 = vrot.slane %v315_v63, 1 }
  0xbe   : > { %v317_v1 = vadd.f32 %v316_v0, %v315_v63 }
  0xc0   : > { %447 = vpush %v317_v1 }
  0xe9   : > { %s446_s26 = spop %445 }
  0xea   : > { %v304_v2 = vstv %s446_s26 }
  0xeb   : > { %306 = vst.msk [vmem:[%s230_s25] sm:$0x1] %vm305_vm7, %v304_v2 }
  0xf1   : > { %s448_s30 = spop %447 }
  0xf2   : > { %v319_v3 = vstv %s448_s30 }
  0xf3   : > { %320 = vst.msk [vmem:[%s236_s29] sm:$0x1] %vm305_vm7, %v319_v3 }
  0xf4 PF: > { %s14_s14 = sadd.s32 1, %s506_s14   ;;  %s588_s12 = smov %s502_s13 }
  0xf5   : > { %p11_p5 = scmp.ge.s32.totalorder %s14_s14, 4   ;;  %s589_s13 = smov %s591_s15 }
  0xf7   :  { %13 = sbr.rel (!%p11_p5) target bundleno = 2 (0x2), region = 73 }

// kernel: fs_aux_ce_loss.2
= control target key start
LH: loop header
LB: loop body
LE: loop exit
PB: predicated region body
PF: predicated region fallthrough
CT: control target
= control target key end

     0   :  { %s540_s12 = smov 0   ;;  %s542_s13 = smov 0   ;;  %s599_s0 = inlined_call_operand.vmem [shape: f32[2,4,2,128], index: 0, kind: input, shape index: {}]   ;;  %s600_s1 = inlined_call_operand.vmem [shape: s32[2,2,128], index: 1, kind: input, shape index: {}]   ;;  %s601_s2 = inlined_call_operand.vmem [shape: f32[2,1,1,1], index: 2, kind: output, shape index: {0}]   ;;  %s602_s3 = inlined_call_operand.vmem [shape: f32[2,1,1,1], index: 3, kind: output, shape index: {1}]  }
   0x1   :  { %s544_s14 = smov 0  }
   0x2 LB: > { %s26_s15 = sadd.s32 1, %s513_s13  ;;  %p448_p0 = scmp.ge.s32.totalorder %s517_s14, 1  ;;  %s517_s14 = sphi %s544_s14, %s14_s14   ;;  %s513_s13 = sphi %s542_s13, %s604_s13   ;;  %s509_s12 = sphi %s540_s12, %s603_s12  }
   0x3   : > { %p28_p1 = scmp.ge.s32.totalorder %s26_s15, 2  ;;  %p175_p2 = scmp.lt.s32.totalorder %s517_s14, 3 }
   0x5   : > { %s606_s15 = smov (%p28_p1, %s26_s15), 0  ;;  %p176_p3 = pnand %p448_p0, %p175_p2 }
   0x6   : > { %p216_p4 = scmp.lt.s32.totalorder (!%p176_p3), %s509_s12, 1 }
   0x7   : > { %179 = sbr.rel (%p176_p3) target bundleno = 244 (0xf4), region = 28 }
   0xc   : > { %s608_s12 = smov (!%p216_p4, %s509_s12), 1  ;;  %vm248_vm0 = vcmask 1041408   ;;  %v519_v48 = vmov 0.0   ;;  %vm307_vm6 = vcmask 0  }
   0xd   : > { %s455_s16 = sshll.u32 %s608_s12, 3  ;;  %s451_s20 = sshll.u32 %s608_s12, 1 }
   0xe   : > { %s223_s19 = scalar_lea.vmem %s599_s0, %s455_s16  ;;  %s230_s23 = scalar_lea.vmem %s600_s1, %s451_s20 }
   0xf   : > { %v243_v0 = vld [vmem:[%s223_s19] sm:$0x3]  ;;  %v244_v1 = vld [vmem:[%s223_s19 + $0x2] sm:$0x3]  ;;  %v245_v2 = vld [vmem:[%s223_s19 + $0x4] sm:$0x3]  ;;  %s236_s26 = scalar_lea.vmem %s601_s2, %s608_s12  ;;  %s242_s30 = scalar_lea.vmem %s602_s3, %s608_s12 }
  0x10   : > { %v246_v3 = vld [vmem:[%s223_s19 + $0x6] sm:$0x3]  ;;  %v249_v4 = vsel %vm248_vm0, %v243_v0, -inf  ;;  %v250_v5 = vsel %vm248_vm0, %v244_v1, -inf  ;;  %v251_v6 = vsel %vm248_vm0, %v245_v2, -inf }
  0x11   : > { %v252_v7 = vsel %vm248_vm0, %v246_v3, -inf  ;;  %v253_v8 = vmax.f32 %v249_v4, %v250_v5  ;;  %v247_v19 = vld [vmem:[%s230_s23] sm:$0x3] }
  0x12   : > { %v254_v9 = vmax.f32 %v251_v6, %v252_v7  ;;  %vm278_vm1 = vcmp.eq.s32.totalorder %v247_v19, 0  ;;  %vm279_vm2 = vcmp.eq.s32.totalorder %v247_v19, 1  ;;  %vm280_vm3 = vcmp.eq.s32.totalorder %v247_v19, 2 }
  0x13   : > { %v282_v25 = vsel %vm278_vm1, %v243_v0, 0.0  ;;  %v283_v26 = vsel %vm279_vm2, %v244_v1, 0.0  ;;  %v284_v34 = vsel %vm280_vm3, %v245_v2, 0.0  ;;  %vm281_vm4 = vcmp.eq.s32.totalorder %v247_v19, 3 }
  0x14   : > { %v255_v10 = vmax.f32 %v253_v8, %v254_v9  ;;  %v286_v32 = vsel %vm248_vm0, %v282_v25, 0.0  ;;  %v287_v33 = vsel %vm248_vm0, %v283_v26, 0.0  ;;  %v289_v37 = vsel %vm248_vm0, %v284_v34, 0.0 }
  0x15   : > { %v288_v36 = vadd.f32 %v287_v33, %v286_v32  ;;  %v285_v38 = vsel %vm281_vm4, %v246_v3, 0.0  ;;  %vm293_vm5 = vcmp.ne.s32.totalorder %v247_v19, 4294967295 }
  0x16   : > { %v256_v11 = vsub.f32 %v243_v0, %v255_v10  ;;  %v257_v12 = vsub.f32 %v244_v1, %v255_v10  ;;  %v258_v13 = vsub.f32 %v245_v2, %v255_v10  ;;  %v259_v14 = vsub.f32 %v246_v3, %v255_v10 }
  0x17   : > { %v290_v39 = vadd.f32 %v289_v37, %v288_v36  ;;  %v291_v40 = vsel %vm248_vm0, %v285_v38, 0.0  ;;  %v452_v49 = vsel %vm293_vm5, 1.0, %v519_v48 }
  0x18   : > { %v260_v15 = vmul.f32 1.442695, %v256_v11  ;;  %v262_v16 = vmul.f32 1.442695, %v257_v12  ;;  %v264_v17 = vmul.f32 1.442695, %v258_v13 }
  0x19   : > { %v266_v18 = vmul.f32 1.442695, %v259_v14  ;;  %v292_v43 = vadd.f32 %v291_v40, %v290_v39  ;;  %v311_v50 = vsel %vm248_vm0, %v452_v49, 0.0 }
  0x1a   : > { %485 = vpow2.f32 %v260_v15 }
  0x1b   : > { %487 = vpow2.f32 %v262_v16 }
  0x1c   : > { %489 = vpow2.f32 %v264_v17 }
  0x1d   : > { %491 = vpow2.f32 %v266_v18 }
  0x20   : > { %v486_v20 = vpop.eup %485 }
  0x21   : > { %v488_v21 = vpop.eup %487  ;;  %v268_v22 = vsel %vm248_vm0, %v486_v20, 0.0 }
  0x22   : > { %v490_v23 = vpop.eup %489  ;;  %v269_v24 = vsel %vm248_vm0, %v488_v21, 0.0 }
  0x23   : > { %v492_v27 = vpop.eup %491  ;;  %v270_v28 = vadd.f32 %v269_v24, %v268_v22  ;;  %v271_v29 = vsel %vm248_vm0, %v490_v23, 0.0 }
  0x24   : > { %v273_v30 = vsel %vm248_vm0, %v492_v27, 0.0 }
  0x25   : > { %v272_v31 = vadd.f32 %v271_v29, %v270_v28 }
  0x27   : > { %v274_v35 = vadd.f32 %v273_v30, %v272_v31 }
  0x29   : > { %493 = vlog2.f32 %v274_v35 }
  0x2f   : > { %v494_v41 = vpop.eup %493 }
  0x30   : > { %v276_v42 = vmul.f32 0.6931472, %v494_v41 }
  0x32   : > { %v277_v44 = vadd.f32 %v276_v42, %v255_v10 }
  0x34   : > { %v294_v45 = vsub.f32 %v277_v44, %v292_v43 }
  0x36   : > { %v295_v46 = vsel %vm293_vm5, %v294_v45, 0.0 }
  0x37   : > { %v296_v47 = vsel %vm248_vm0, %v295_v46, 0.0 }
  0x38   : > { %297 = vadd.xlane.f32.xlu0 %v296_v47 }
  0x40   : > { %312 = vadd.xlane.f32.xlu0 %v311_v50 }
  0xab   : > { %v298_v51 = vpop.xlane.xlu0 %297 }
  0xac   : > { %v299_v52 = vrot.slane %v298_v51, 4 }
  0xae   : > { %v300_v53 = vadd.f32 %v299_v52, %v298_v51 }
  0xb0   : > { %v301_v54 = vrot.slane %v300_v53, 2 }
  0xb2   : > { %v302_v55 = vadd.f32 %v301_v54, %v300_v53 }
  0xb3   : > { %v313_v56 = vpop.xlane.xlu0 %312 }
  0xb4   : > { %v314_v57 = vrot.slane %v313_v56, 4  ;;  %v303_v58 = vrot.slane %v302_v55, 1 }
  0xb6   : > { %v315_v59 = vadd.f32 %v314_v57, %v313_v56  ;;  %v304_v60 = vadd.f32 %v303_v58, %v302_v55 }
  0xb8   : > { %v316_v61 = vrot.slane %v315_v59, 2  ;;  %456 = vpush %v304_v60 }
  0xba   : > { %v317_v62 = vadd.f32 %v316_v61, %v315_v59 }
  0xbc   : > { %v318_v63 = vrot.slane %v317_v62, 1 }
  0xbe   : > { %v319_v0 = vadd.f32 %v318_v63, %v317_v62 }
  0xc0   : > { %458 = vpush %v319_v0 }
  0xe9   : > { %s457_s27 = spop %456 }
  0xea   : > { %v306_v1 = vstv %s457_s27 }
  0xeb   : > { %308 = vst.msk [vmem:[%s236_s26] sm:$0x1] %vm307_vm6, %v306_v1 }
  0xf1   : > { %s459_s4 = spop %458 }
  0xf2   : > { %v321_v2 = vstv %s459_s4 }
  0xf3   : > { %322 = vst.msk [vmem:[%s242_s30] sm:$0x1] %vm307_vm6, %v321_v2 }
  0xf4 PF: > { %s14_s14 = sadd.s32 1, %s517_s14   ;;  %s603_s12 = smov %s513_s13 }
  0xf5   : > { %p11_p5 = scmp.ge.s32.totalorder %s14_s14, 4   ;;  %s604_s13 = smov %s606_s15 }
  0xf7   :  { %13 = sbr.rel (!%p11_p5) target bundleno = 2 (0x2), region = 73 }

</bundles_post_ra>
